<compile_context>
chip_gen: v7x
topology: tpu7x:2x2x1
jax: 0.10.0
libtpu: 0.0.40
codegen_flags: <defaults>
</compile_context>

<pallas_src>
import jax
import jax.numpy as jnp
from jax import lax
from jax.experimental import pallas as pl
from jax.experimental.pallas import tpu as pltpu


def _make_kernel(B, TB):
    def kernel(thr_ref, w_ref, yp_ref, yr_ref, out_ref, acc_ref):
        inner = pl.program_id(1)
        n_inner = pl.num_programs(1)
        g = pl.program_id(0) * n_inner + inner  # global (unclamped) batch block

        @pl.when(inner == 0)
        def _():
            acc_ref[...] = jnp.zeros_like(acc_ref)

        # Native-dtype block, upcast in-register (free on the VPU vs. the DMA).
        yp = yp_ref[...].astype(jnp.float32)  # (TB, S, D)
        yr = yr_ref[...].astype(jnp.float32)

        # Sum over D; the 1/D of mean(|diff|) is folded into the final scale,
        # and the threshold was pre-scaled by D in the wrapper.
        row_sum = jnp.sum(jnp.abs(yp - yr), axis=-1)      # (TB, S)
        hinge = jnp.maximum(row_sum - thr_ref[0], 0.0)    # relu(sum - D*sigma)
        contrib = hinge * w_ref[...]                      # (TB, S) * (1, S)

        # Zero out rows past the real batch (last partial block and the
        # duplicated clamped blocks of an uneven outer/inner split).
        # jnp.where (not a 0/1 multiply) so garbage/NaN padding cannot leak.
        row_idx = g * TB + lax.broadcasted_iota(jnp.int32, (TB, 1), 0)
        contrib = jnp.where(row_idx < B, contrib, 0.0)

        acc_ref[...] += contrib

        @pl.when(inner == n_inner - 1)
        def _():
            out_ref[...] = jnp.sum(acc_ref[...], axis=(0, 1), keepdims=True)

    return kernel


def ept_hinge_loss(y_pred, y_real, global_std, *, target_block_bytes=2 << 20):
    """y_pred, y_real: [B, S, D] (any float dtype); global_std: [D].

    Returns a scalar float32 equal to the PyTorch EPTHingeLoss forward.
    """
    B, S, D = y_pred.shape
    assert y_real.shape == (B, S, D)

    # --- tile selection: biggest batch tile that keeps a block <= ~2 MiB/input
    # (2 inputs x 2 pipeline buffers stays well under VMEM on v5e/v6e/v7x).
    itemsize = jnp.dtype(y_pred.dtype).itemsize
    bytes_per_row = S * D * itemsize
    TB = int(max(1, min(B, target_block_bytes // max(1, bytes_per_row))))

    n_blocks = pl.cdiv(B, TB)
    n_outer = 2 if n_blocks >= 2 else 1      # let v7x's 2 TensorCores split it
    n_inner = pl.cdiv(n_blocks, n_outer)

    # Scalar threshold with the 1/D folded in: relu(sum_D|diff| - D*sigma).
    thr = (jnp.mean(global_std.astype(jnp.float32)) * jnp.float32(D)).reshape(1)
    # Sequence weights, hoisted out of the grid loop (constant index_map ->
    # DMA'd once, resident in VMEM).
    w = (jnp.arange(1, S + 1, dtype=jnp.float32) / jnp.float32(S)).reshape(1, S)

    def batch_block(o, i, thr_ref):
        g = o * n_inner + i
        # Clamp so the DMA origin of the (masked) extra blocks stays in range.
        return (jnp.minimum(g, n_blocks - 1), 0, 0)

    kernel = _make_kernel(B, TB)

    partials = pl.pallas_call(
        kernel,
        out_shape=jax.ShapeDtypeStruct((n_outer, 1), jnp.float32),
        grid_spec=pltpu.PrefetchScalarGridSpec(
            num_scalar_prefetch=1,
            grid=(n_outer, n_inner),
            in_specs=[
                pl.BlockSpec((1, S), lambda o, i, thr_ref: (0, 0)),   # weights
                pl.BlockSpec((TB, S, D), batch_block),                 # y_pred
                pl.BlockSpec((TB, S, D), batch_block),                 # y_real
            ],
            out_specs=pl.BlockSpec((1, 1), lambda o, i, thr_ref: (o, 0)),
            scratch_shapes=[pltpu.VMEM((TB, S), jnp.float32)],
        ),
        compiler_params=pltpu.CompilerParams(
            dimension_semantics=("parallel", "arbitrary"),
            vmem_limit_bytes=32 << 20,
        ),
    )(thr, w, y_pred, y_real)

    # Tiny epilogue in JAX: sum per-core partials, apply 1/(B*S*D) and negate.
    total = jnp.sum(partials)
    return -(total / jnp.float32(B * S * D))


def ept_hinge_loss_ref(y_pred, y_real, global_std):
    """Pure-JAX reference mirroring the PyTorch forward."""
    y_pred = y_pred.astype(jnp.float32)
    y_real = y_real.astype(jnp.float32)
    B, S, D = y_pred.shape
    err = jnp.mean(jnp.abs(y_pred - y_real), axis=-1)  # [B, S]
    sigma = jnp.mean(global_std.astype(jnp.float32))
    mask = jnp.maximum(err - sigma, 0.0)
    w = jnp.arange(1, S + 1, dtype=jnp.float32) / S
    return -jnp.mean(mask * w[None, :])


if __name__ == "__main__":
    key = jax.random.PRNGKey(0)

    # --- Test 1: module-consistent small shape (batch=2, seq=8, hidden=32).
    B, S, D = 2, 8, 32
    k1, k2, k3, k4, k5 = jax.random.split(key, 5)
    y_pred = jax.random.normal(k1, (B, S, D), dtype=jnp.float32)
    y_real = jax.random.normal(k2, (B, S, D), dtype=jnp.float32)
    global_std = jnp.abs(jax.random.normal(k3, (D,), dtype=jnp.float32)) * 0.5

    out = jax.block_until_ready(ept_hinge_loss(y_pred, y_real, global_std))
    ref = jax.block_until_ready(ept_hinge_loss_ref(y_pred, y_real, global_std))
    assert jnp.allclose(out, ref, atol=1e-6, rtol=1e-5), (out, ref)

    # --- Test 2: bf16 inputs, non-divisible batch, multi-block grid
    # (exercises native-dtype streaming, row masking and the 2-axis grid).
    B2, S2, D2 = 37, 16, 64
    yp2 = jax.random.normal(k4, (B2, S2, D2), dtype=jnp.bfloat16)
    yr2 = jax.random.normal(k5, (B2, S2, D2), dtype=jnp.bfloat16)
    std2 = jnp.abs(jax.random.normal(k3, (D2,), dtype=jnp.float32)) * 0.3

    small_block = S2 * D2 * jnp.dtype(jnp.bfloat16).itemsize * 8  # force TB=8
    out2 = jax.block_until_ready(
        ept_hinge_loss(yp2, yr2, std2, target_block_bytes=small_block)
    )
    ref2 = jax.block_until_ready(ept_hinge_loss_ref(yp2, yr2, std2))
    assert jnp.allclose(out2, ref2, atol=1e-6, rtol=1e-5), (out2, ref2)

    print("KERNEL_OK")
</pallas_src>

<mosaic_0001>
module attributes {stable_mosaic.version = 11 : i64} {
  func.func @kernel(%arg0: i32, %arg1: i32, %arg2: memref<1xf32, #tpu.memory_space<smem>>, %arg3: memref<1x8xf32, #tpu.memory_space<vmem>>, %arg4: memref<2x8x32xf32, #tpu.memory_space<vmem>>, %arg5: memref<2x8x32xf32, #tpu.memory_space<vmem>>, %arg6: memref<1x1xf32, #tpu.memory_space<vmem>>, %arg7: memref<2x8xf32, #tpu.memory_space<vmem>>) attributes {dimension_semantics = [#tpu.dimension_semantics<parallel>, #tpu.dimension_semantics<arbitrary>], iteration_bounds = array<i64: 1, 1>, scalar_prefetch = 1 : i64, scratch_operands = 1 : i64, tpu.core_type = #tpu.core_type<tc>, window_params = [{pipeline_mode = #tpu.pipeline_mode<synchronous>, transform_indices = @transform_0, window_bounds = array<i64: 1, 8>}, {transform_indices = @transform_1, window_bounds = array<i64: 2, 8, 32>}, {transform_indices = @transform_2, window_bounds = array<i64: 2, 8, 32>}, {transform_indices = @transform_3, window_bounds = array<i64: 1, 1>}]} {
    %c1_i32 = arith.constant 1 : i32
    %0 = arith.muli %arg0, %c1_i32 : i32
    %1 = arith.addi %0, %arg1 : i32
    %c0_i32 = arith.constant 0 : i32
    %2 = arith.cmpi eq, %arg1, %c0_i32 : i32
    %3 = arith.extui %2 : i1 to i32
    %c0_i32_0 = arith.constant 0 : i32
    %4 = arith.cmpi ne, %3, %c0_i32_0 : i32
    scf.if %4 {
      %cst_18 = arith.constant 0.000000e+00 : f32
      %34 = vector.broadcast %cst_18 : f32 to vector<2x8xf32>
      %c0_19 = arith.constant 0 : index
      %c0_20 = arith.constant 0 : index
      %35 = vector.load %arg7[%c0_19, %c0_20] : memref<2x8xf32, #tpu.memory_space<vmem>>, vector<2x8xf32>
      tpu.vector_store %arg7[%c0_19, %c0_20], %34 {strides = array<i32>} : memref<2x8xf32, #tpu.memory_space<vmem>>, vector<2x8xf32>,
    } else {
    }
    %c0 = arith.constant 0 : index
    %c0_1 = arith.constant 0 : index
    %c0_2 = arith.constant 0 : index
    %5 = vector.load %arg4[%c0, %c0_1, %c0_2] : memref<2x8x32xf32, #tpu.memory_space<vmem>>, vector<2x8x32xf32>
    %c0_3 = arith.constant 0 : index
    %c0_4 = arith.constant 0 : index
    %c0_5 = arith.constant 0 : index
    %6 = vector.load %arg5[%c0_3, %c0_4, %c0_5] : memref<2x8x32xf32, #tpu.memory_space<vmem>>, vector<2x8x32xf32>
    %7 = arith.subf %5, %6 : vector<2x8x32xf32>
    %8 = math.absf %7 : vector<2x8x32xf32>
    %cst = arith.constant dense<0.000000e+00> : vector<2x8xf32>
    %9 = vector.multi_reduction <add>, %8, %cst [2] : vector<2x8x32xf32> to vector<2x8xf32>
    %c0_6 = arith.constant 0 : index
    %10 = memref.load %arg2[%c0_6] : memref<1xf32, #tpu.memory_space<smem>>
    %11 = vector.broadcast %10 : f32 to vector<2x8xf32>
    %12 = arith.subf %9, %11 : vector<2x8xf32>
    %cst_7 = arith.constant 0.000000e+00 : f32
    %13 = vector.broadcast %cst_7 : f32 to vector<2x8xf32>
    %14 = arith.maximumf %12, %13 : vector<2x8xf32>
    %c0_8 = arith.constant 0 : index
    %c0_9 = arith.constant 0 : index
    %15 = vector.load %arg3[%c0_8, %c0_9] : memref<1x8xf32, #tpu.memory_space<vmem>>, vector<1x8xf32>
    %16 = vector.broadcast %15 : vector<1x8xf32> to vector<2x8xf32>
    %17 = arith.mulf %14, %16 : vector<2x8xf32>
    %c2_i32 = arith.constant 2 : i32
    %18 = arith.muli %1, %c2_i32 : i32
    %19 = tpu.iota {dimensions = array<i32: 0>} : vector<2x1xi32>
    %20 = vector.broadcast %18 : i32 to vector<2x1xi32>
    %21 = arith.addi %20, %19 : vector<2x1xi32>
    %c2_i32_10 = arith.constant 2 : i32
    %22 = vector.broadcast %c2_i32_10 : i32 to vector<2x1xi32>
    %23 = arith.cmpi slt, %21, %22 : vector<2x1xi32>
    %cst_11 = arith.constant 0.000000e+00 : f32
    %24 = vector.shape_cast %23 : vector<2x1xi1> to vector<2x1xi1>
    %25 = vector.broadcast %24 : vector<2x1xi1> to vector<2x8xi1>
    %26 = vector.broadcast %cst_11 : f32 to vector<2x8xf32>
    %27 = arith.select %25, %17, %26 : vector<2x8xi1>, vector<2x8xf32>
    %c0_12 = arith.constant 0 : index
    %c0_13 = arith.constant 0 : index
    %28 = vector.load %arg7[%c0_12, %c0_13] : memref<2x8xf32, #tpu.memory_space<vmem>>, vector<2x8xf32>
    %29 = arith.addf %28, %27 : vector<2x8xf32>
    %c0_14 = arith.constant 0 : index
    %c0_15 = arith.constant 0 : index
    %30 = vector.load %arg7[%c0_14, %c0_15] : memref<2x8xf32, #tpu.memory_space<vmem>>, vector<2x8xf32>
    tpu.vector_store %arg7[%c0_14, %c0_15], %29 {strides = array<i32>} : memref<2x8xf32, #tpu.memory_space<vmem>>, vector<2x8xf32>,
    %c0_i32_16 = arith.constant 0 : i32
    %31 = arith.cmpi eq, %arg1, %c0_i32_16 : i32
    %32 = arith.extui %31 : i1 to i32
    %c0_i32_17 = arith.constant 0 : i32
    %33 = arith.cmpi ne, %32, %c0_i32_17 : i32
    scf.if %33 {
      %c0_18 = arith.constant 0 : index
      %c0_19 = arith.constant 0 : index
      %34 = vector.load %arg7[%c0_18, %c0_19] : memref<2x8xf32, #tpu.memory_space<vmem>>, vector<2x8xf32>
      %35 = vector.shape_cast %34 : vector<2x8xf32> to vector<1x2x8xf32>
      %cst_20 = arith.constant dense<0.000000e+00> : vector<1xf32>
      %36 = vector.multi_reduction <add>, %35, %cst_20 [1, 2] : vector<1x2x8xf32> to vector<1xf32>
      %37 = vector.shape_cast %36 : vector<1xf32> to vector<1x1x1xf32>
      %38 = vector.extract %37[0, 0, 0] : f32 from vector<1x1x1xf32>
      %39 = vector.broadcast %38 : f32 to vector<1x1xf32>
      %c0_21 = arith.constant 0 : index
      %c0_22 = arith.constant 0 : index
      %40 = vector.load %arg6[%c0_21, %c0_22] : memref<1x1xf32, #tpu.memory_space<vmem>>, vector<1x1xf32>
      tpu.vector_store %arg6[%c0_21, %c0_22], %39 {strides = array<i32>} : memref<1x1xf32, #tpu.memory_space<vmem>>, vector<1x1xf32>,
    } else {
    }
    return
  }
  func.func @transform_0(%arg0: i32, %arg1: i32, %arg2: memref<1xf32, #tpu.memory_space<smem>>) -> (i32, i32) {
    %c0_i32 = arith.constant 0 : i32
    %c0_i32_0 = arith.constant 0 : i32
    %c0_i32_1 = arith.constant 0 : i32
    return %c0_i32, %c0_i32_0 : i32, i32
  }
  func.func @transform_1(%arg0: i32, %arg1: i32, %arg2: memref<1xf32, #tpu.memory_space<smem>>) -> (i32, i32, i32) {
    %c1_i32 = arith.constant 1 : i32
    %0 = arith.muli %arg0, %c1_i32 : i32
    %1 = arith.addi %0, %arg1 : i32
    %c0_i32 = arith.constant 0 : i32
    %2 = arith.minsi %1, %c0_i32 : i32
    %c0_i32_0 = arith.constant 0 : i32
    %c0_i32_1 = arith.constant 0 : i32
    %c0_i32_2 = arith.constant 0 : i32
    return %2, %c0_i32_0, %c0_i32_1 : i32, i32, i32
  }
  func.func @transform_2(%arg0: i32, %arg1: i32, %arg2: memref<1xf32, #tpu.memory_space<smem>>) -> (i32, i32, i32) {
    %c1_i32 = arith.constant 1 : i32
    %0 = arith.muli %arg0, %c1_i32 : i32
    %1 = arith.addi %0, %arg1 : i32
    %c0_i32 = arith.constant 0 : i32
    %2 = arith.minsi %1, %c0_i32 : i32
    %c0_i32_0 = arith.constant 0 : i32
    %c0_i32_1 = arith.constant 0 : i32
    %c0_i32_2 = arith.constant 0 : i32
    return %2, %c0_i32_0, %c0_i32_1 : i32, i32, i32
  }
  func.func @transform_3(%arg0: i32, %arg1: i32, %arg2: memref<1xf32, #tpu.memory_space<smem>>) -> (i32, i32) {
    %c0_i32 = arith.constant 0 : i32
    %c0_i32_0 = arith.constant 0 : i32
    return %arg0, %c0_i32 : i32, i32
  }
}

</mosaic_0001>

<bundles_post_ra>
// kernel: tpu_custom_call.1
= control target key start
LH: loop header
LB: loop body
LE: loop exit
PB: predicated region body
PF: predicated region fallthrough
CT: control target
= control target key end

     0   :  { %10 = vsyncpa [#allocation6], 0  ;;  %s337_s0 = inlined_call_operand.<no memory space> [shape: f32[1], index: 0, kind: input, shape index: {}]   ;;  %s338_s1 = inlined_call_operand.vmem [shape: f32[1,8], index: 1, kind: input, shape index: {}]   ;;  %s339_s2 = inlined_call_operand.hbm [shape: f32[2,8,32], index: 2, kind: input, shape index: {}]   ;;  %s340_s3 = inlined_call_operand.hbm [shape: f32[2,8,32], index: 3, kind: input, shape index: {}]   ;;  %s341_s4 = inlined_call_operand.hbm [shape: f32[1,1], index: 4, kind: output, shape index: {}]  }
   0x1   :  { %11 = vsyncpa [#allocation9], 0 }
   0x2   :  { %12 = vsyncpa [#allocation7], 0  ;;  %s260_s15 = smov [#allocation5]   ;;  %s188_s19 = scalar_lea.hbm %s339_s2, 256 }
   0x3   :  { %s26_s16 = sshll.u32 %s260_s15, 4  ;;  %p189_p0 = scmp.ne.s32.totalorder %s339_s2, %s188_s19  ;;  %s27_s16 = int_to_ptr.vmem [resolvable:$true] %s26_s16 }
   0x4   :  { %p192_p1 = scmp.lt.u32.totalorder %s188_s19, %s339_s2 }
   0x6   :  { %p194_p2 = pnand %p192_p1, %p189_p0 }
   0x8   :  { %197 = shalt.err (!%p194_p2)
}
   0x9   :  { %s198_s24 = scalar_lea.vmem %s27_s16, 256  ;;  %p203_p4 = scmp.lt.s32.totalorder %s27_s16, %s27_s16 }
   0xa   :  { %p199_p3 = scmp.ne.s32.totalorder %s27_s16, %s198_s24  ;;  %p204_p5 = scmp.lt.s32.totalorder %s198_s24, %s198_s24 }
   0xc   :  { %p205_p6 = por %p204_p5, %p203_p4 }
   0xe   :  { %p206_p7 = pnand %p205_p6, %p199_p3 }
  0x10   :  { %209 = shalt.err (!%p206_p7)
}
  0x11   :  { %s261_s25 = smov 128   ;;  %s262_s26 = smov 8  }
  0x12   :  { %32 = dma.hbm_to_vmem [thread:$0]  %s339_s2, 256, %s27_s16, [#allocation6], %s261_s25, %s261_s25, %s262_s26  }
  0x13   :  { %s263_s29 = smov [#allocation8]   ;;  %s210_s7 = scalar_lea.hbm %s340_s3, 256 }
  0x14   :  { %s44_s30 = sshll.u32 %s263_s29, 4  ;;  %p211_p8 = scmp.ne.s32.totalorder %s340_s3, %s210_s7  ;;  %s45_s30 = int_to_ptr.vmem [resolvable:$true] %s44_s30 }
  0x15   :  { %p214_p9 = scmp.lt.u32.totalorder %s210_s7, %s340_s3 }
  0x17   :  { %p216_p10 = pnand %p214_p9, %p211_p8 }
  0x19   :  { %219 = shalt.err (!%p216_p10)
}
  0x1a   :  { %s220_s12 = scalar_lea.vmem %s45_s30, 256  ;;  %p225_p12 = scmp.lt.s32.totalorder %s45_s30, %s45_s30 }
  0x1b   :  { %p221_p11 = scmp.ne.s32.totalorder %s45_s30, %s220_s12  ;;  %p226_p13 = scmp.lt.s32.totalorder %s220_s12, %s220_s12 }
  0x1d   :  { %p227_p0 = por %p226_p13, %p225_p12 }
  0x1f   :  { %p228_p1 = pnand %p227_p0, %p221_p11 }
  0x21   :  { %231 = shalt.err (!%p228_p1)
}
  0x22   :  { %50 = dma.hbm_to_vmem [thread:$0]  %s340_s3, 256, %s45_s30, [#allocation9], %s261_s25, %s261_s25, %s262_s26  }
  0x23   :  { %254 = dma.done.wait [#allocation6], 256  }
  0x24   :  { %255 = vsyncadd [#allocation6], 4294967040 }
  0x25   :  { %256 = dma.done.wait [#allocation9], 256  }
  0x26   :  { %257 = vsyncadd [#allocation9], 4294967040  ;;  %v72_v0 = vld [vmem:[#allocation5] sm:$0xff]  ;;  %v74_v1 = vld [vmem:[#allocation8] sm:$0xff]  ;;  %vm80_vm0 = vcmask 261120   ;;  %v264_v11 = vmov 0   ;;  %v88_v12 = vstv %s337_s0  ;;  %v106_v23 = vlaneseq }
  0x27   :  { %v73_v2 = vld [vmem:[#allocation5 + $0x8] sm:$0xff]  ;;  %v76_v3 = vsub.f32 %v72_v0, %v74_v1  ;;  %v75_v4 = vld [vmem:[#allocation8 + $0x8] sm:$0xff]  ;;  %186 = vset.pattern.permute.xlu1 %v264_v11  ;;  %187 = vset.pattern.permute.xlu0 %v264_v11  ;;  %vm70_vm1 = vcmask 58368   ;;  %v265_v21 = vmov 0.0   ;;  %vm131_vm2 = vcmask 1041409   ;;  %s266_s0 = smov [#allocation10]  }
  0x28   :  { %v176_v5 = vld [vmem:[%s338_s1] ss:$0 sm:$0xff]  ;;  %v77_v6 = vsub.f32 %v73_v2, %v75_v4  ;;  %71 = vst.msk [vmem:[#allocation2] sm:$0x3] %vm70_vm1, %v265_v21  ;;  %v107_v24 = vshrl.u32 %v106_v23, 7  ;;  %v122_v25 = vand.u32 127, %v106_v23 }
  0x29   :  { %100 = vbcast.lane.b32.xlu1 %v176_v5, 256  ;;  %v78_v7 = vand.u32 2147483647, %v76_v3  ;;  %s162_s1 = sshll.u32 %s266_s0, 4  ;;  %vm154_vm4 = vcmask 0   ;;  %s163_s1 = int_to_ptr.vmem [resolvable:$true] %s162_s1 }
  0x2a   :  { %v79_v8 = vand.u32 2147483647, %v77_v6  ;;  %v125_v26 = vsub.s32 %v122_v25, %v107_v24  ;;  %vm110_vm3 = vcmp.lt.s32.totalorder %v107_v24, 2  ;;  %s232_s18 = scalar_lea.vmem %s163_s1, 16  ;;  %s236_s19 = scalar_lea.vmem %s163_s1, 32 }
  0x2b   :  { %v81_v9 = vsel %vm80_vm0, %v78_v7, 0.0  ;;  %p233_p2 = scmp.ne.s32.totalorder %s163_s1, %s232_s18  ;;  %p237_p3 = scmp.lt.s32.totalorder %s163_s1, %s163_s1 }
  0x2c   :  { %82 = vadd.xlane.f32.xlu0 %v81_v9  ;;  %v84_v10 = vsel %vm80_vm0, %v79_v8, 0.0  ;;  %p238_p4 = scmp.lt.s32.totalorder %s236_s19, %s232_s18 }
  0x2e   :  { %p239_p5 = por %p238_p4, %p237_p3 }
  0x2f   :  { %v135_v31 = vld [vmem:[#allocation2] sm:$0x3] }
  0x30   :  { %85 = vadd.xlane.f32.xlu0 %v84_v10  ;;  %p240_p6 = pnand %p239_p5, %p233_p2 }
  0x9b   :  { %v101_v15 = vpop.permute.xlu1 %100 }
  0xb9   :  { %v83_v13 = vpop.xlane.xlu0 %82 }
  0xba   :  { %v89_v14 = vsub.f32 %v83_v13, %v88_v12 }
  0xbc   :  { %v91_v16 = vmax.f32 %v89_v14, 0.0 }
  0xbd   :  { %v86_v17 = vpop.xlane.xlu0 %85 }
  0xbe   :  { %v103_v18 = vmul.f32 %v101_v15, %v91_v16  ;;  %v90_v19 = vsub.f32 %v86_v17, %v88_v12 }
  0xc0   :  { %v92_v20 = vmax.f32 %v90_v19, 0.0  ;;  %116 = vperm.xlu1 %186, %v103_v18  }
  0xc2   :  { %v104_v22 = vmul.f32 %v101_v15, %v92_v20 }
  0xc4   :  { %119 = vperm.xlu0 %187, %v104_v22  }
 0x13f   :  { %v117_v27 = vpop.permute.xlu1 %116 }
 0x140   :  { %v126_v29 = vrot.slane %v117_v27, %v125_v26 }
 0x143   :  { %v120_v28 = vpop.permute.xlu0 %119 }
 0x144   :  { %v130_v30 = vrot.slane %v120_v28, %v125_v26 }
 0x146   :  { %v132_v32 = vsel %vm131_vm2, %v130_v30, %v126_v29 }
 0x147   :  { %v134_v33 = vsel %vm110_vm3, %v132_v32, 0.0 }
 0x148   :  { %v136_v34 = vadd.f32 %v135_v31, %v134_v33 }
 0x14a   :  { %138 = vst.msk [vmem:[#allocation2] sm:$0x3] %vm70_vm1, %v136_v34 }
 0x151   :  { %v142_v35 = vld [vmem:[#allocation2] sm:$0x3] }
 0x152   :  { %v143_v36 = vsel %vm70_vm1, %v142_v35, 0.0 }
 0x153   :  { %144 = vadd.xlane.f32.xlu1 %v143_v36 }
 0x1e0   :  { %v145_v37 = vpop.xlane.xlu1 %144 }
 0x1e1   :  { %v146_v38 = vrot.slane %v145_v37, 4 }
 0x1e3   :  { %v147_v39 = vadd.f32 %v146_v38, %v145_v37 }
 0x1e5   :  { %v148_v40 = vrot.slane %v147_v39, 2 }
 0x1e7   :  { %v149_v41 = vadd.f32 %v148_v40, %v147_v39 }
 0x1e9   :  { %v150_v42 = vrot.slane %v149_v41, 1 }
 0x1eb   :  { %v151_v43 = vadd.f32 %v150_v42, %v149_v41 }
 0x1ed   :  { %177 = vpush %v151_v43 }
 0x21e   :  { %s178_s17 = spop %177 }
 0x21f   :  { %v153_v44 = vstv %s178_s17 }
 0x220   :  { %155 = vst.msk [vmem:[#allocation10] sm:$0x1] %vm154_vm4, %v153_v44 }
 0x221   :  { %243 = shalt.err (!%p240_p6)
}
 0x222   :  { %s244_s22 = scalar_lea.hbm %s341_s4, 16 }
 0x223   :  { %p245_p7 = scmp.ne.s32.totalorder %s341_s4, %s244_s22  ;;  %p248_p8 = scmp.lt.u32.totalorder %s244_s22, %s341_s4 }
 0x225   :  { %p250_p9 = pnand %p248_p8, %p245_p7 }
 0x227   :  { %253 = shalt.err (!%p250_p9)
}
 0x228   :  { %165 = dma.vmem_to_hbm [thread:$0]  %s163_s1, 16, %s341_s4, [#allocation7]  }
 0x229   :  { %258 = dma.done.wait [#allocation7], 16  }
 0x22a   :  { %259 = vsyncadd [#allocation7], 4294967280 }
 0x22b   :  { %169 = vsyncpa [#allocation6], 1 }
 0x22c   :  { %170 = vsyncpa [#allocation9], 1 }
 0x22d   :  { %171 = vsyncpa [#allocation7], 1 }

</bundles_post_ra>
